<compile_context>
chip_gen: v5e
topology: v5e:2x2
jax: 0.10.0
libtpu: 0.0.40
codegen_flags: <defaults>
</compile_context>

<pallas_src>
import functools

import jax
import jax.numpy as jnp
from jax import lax
from jax.experimental import pallas as pl
from jax.experimental.pallas import tpu as pltpu

_LANES = 128
_SUBLANES = 8
_SUB_ROWS = 256          # compute sub-chunk rows inside one DMA tile


def _cdiv(a, b):
    return -(-a // b)


def _round_up(a, b):
    return _cdiv(a, b) * b


def _num_tensorcores():
    """2 TensorCores per chip on v7x; 1 on v5e/v6e. Fail safe to 1."""
    try:
        kind = jax.devices()[0].device_kind.lower()
    except Exception:
        return 1
    return 2 if "v7" in kind else 1


def _sum_sq_diff_kernel(pos_ref, last_ref, out_ref, acc_ref, *,
                        rows, tile_rows, sub_rows, tiles_per_chunk, needs_mask):
    """Accumulate sum((pos - last)**2) for one chunk of row-tiles.

    grid = (n_par, tiles_per_chunk); axis 1 is the reduction axis.  A VMEM
    (8, 128) accumulator collects 1024 parallel partial sums (VPU adds only);
    it is written to the lane-dense output slab once, at the last step.
    """
    p = pl.program_id(0)
    t = pl.program_id(1)

    @pl.when(t == 0)
    def _init():
        acc_ref[...] = jnp.zeros_like(acc_ref)

    tile_base = (p * tiles_per_chunk + t) * tile_rows
    inner_iters = tile_rows // sub_rows

    if needs_mask:
        # Hoisted out of the inner loop (JAX does not CSE broadcasts).
        base_rows = tile_base + lax.broadcasted_iota(
            jnp.int32, (sub_rows, _LANES), 0)

    def body(i, carry):
        r0 = pl.multiple_of(i * sub_rows, sub_rows)
        a = pos_ref[pl.ds(r0, sub_rows), :].astype(jnp.float32)
        b = last_ref[pl.ds(r0, sub_rows), :].astype(jnp.float32)
        d = a - b
        sq = d * d
        if needs_mask:
            # Zero rows past the logical end (partial last tile).  Select, not
            # multiply, so garbage NaN/Inf in the block pad region is dropped.
            sq = jnp.where((base_rows + r0) < rows, sq, 0.0)
        acc_ref[...] += jnp.sum(
            sq.reshape(sub_rows // _SUBLANES, _SUBLANES, _LANES), axis=0)
        return carry

    lax.fori_loop(0, inner_iters, body, 0)

    @pl.when(t == pl.num_programs(1) - 1)
    def _finalize():
        out_ref[...] = acc_ref[...]


def position_loss(position, position_last, slot_mask, num_objects, *,
                  max_tile_rows=8192, min_pallas_elements=65536):
    """Pallas implementation of PositionLoss.forward (literal torch broadcast)."""
    b, oc = position.shape
    c = oc // num_objects
    n = b * num_objects * c          # number of squared-diff elements (== b*oc)

    position_last = jax.lax.stop_gradient(position_last)     # .detach()
    mean_mask = jnp.mean(slot_mask.astype(jnp.float32))      # tiny; plain JAX

    # Tiny or lane-ragged inputs: a pallas_call boundary (plus any re-layout)
    # would dominate; let XLA fuse the whole thing.
    # TODO(synk): in-kernel lane masking for n % 128 != 0 without re-padding.
    if n % _LANES != 0 or n < max(int(min_pallas_elements), _SUBLANES * _LANES):
        diff = position.astype(jnp.float32) - position_last.astype(jnp.float32)
        return mean_mask * jnp.mean(diff * diff)

    # ---- lane-dense view: free reshape, no jnp.pad HBM round-trip ----------
    rows = n // _LANES
    pos = jnp.reshape(position, (rows, _LANES))        # keeps dtype (bf16 ok)
    pos_last = jnp.reshape(position_last, (rows, _LANES))

    tile_rows = min(int(max_tile_rows), _round_up(rows, _SUBLANES))
    tile_rows = _round_up(tile_rows, _SUBLANES)
    sub_rows = min(_SUB_ROWS, tile_rows)
    tile_rows = _round_up(tile_rows, sub_rows)          # inner loop divisibility
    tiles_total = _cdiv(rows, tile_rows)

    # 2-way split only where there really are 2 TensorCores (v7x) and the tile
    # count splits evenly with enough depth per core to double-buffer.
    n_par = 1
    if _num_tensorcores() >= 2 and tiles_total >= 4 and tiles_total % 2 == 0:
        n_par = 2
    tiles_per_chunk = tiles_total // n_par

    needs_mask = (rows % tile_rows) != 0

    kernel = functools.partial(
        _sum_sq_diff_kernel,
        rows=rows, tile_rows=tile_rows, sub_rows=sub_rows,
        tiles_per_chunk=tiles_per_chunk, needs_mask=needs_mask)

    itemsize = jnp.dtype(position.dtype).itemsize
    out_bytes = n_par * _SUBLANES * _LANES * 4
    cost = pl.CostEstimate(flops=3 * rows * _LANES, transcendentals=0,
                           bytes_accessed=2 * rows * _LANES * itemsize + out_bytes)

    in_map = lambda p, t: (p * tiles_per_chunk + t, 0)

    partials = pl.pallas_call(
        kernel,
        out_shape=jax.ShapeDtypeStruct((n_par * _SUBLANES, _LANES), jnp.float32),
        grid_spec=pltpu.PrefetchScalarGridSpec(
            num_scalar_prefetch=0,
            grid=(n_par, tiles_per_chunk),
            in_specs=[
                pl.BlockSpec((tile_rows, _LANES), in_map),
                pl.BlockSpec((tile_rows, _LANES), in_map),
            ],
            out_specs=pl.BlockSpec((_SUBLANES, _LANES), lambda p, t: (p, 0)),
            scratch_shapes=[pltpu.VMEM((_SUBLANES, _LANES), jnp.float32)],
        ),
        compiler_params=pltpu.CompilerParams(
            dimension_semantics=("parallel", "arbitrary"),
            vmem_limit_bytes=32 * 1024 * 1024,
        ),
        cost_estimate=cost,
    )(pos, pos_last)

    sum_sq = jnp.sum(partials)
    return mean_mask * sum_sq / jnp.float32(n)


def position_loss_ref(position, position_last, slot_mask, num_objects):
    """Pure-JAX reference with the literal PyTorch broadcast."""
    b, oc = position.shape
    c = oc // num_objects
    sm = slot_mask.reshape(b * num_objects, 1, 1, 1).astype(jnp.float32)
    p = position.reshape(b * num_objects, c).astype(jnp.float32)
    q = position_last.reshape(b * num_objects, c).astype(jnp.float32)
    return jnp.mean(sm * (p - q) ** 2)  # broadcasts to (B,1,B,C) like torch


if __name__ == "__main__":
    key = jax.random.PRNGKey(0)

    def make_case(k, batch, num_objects, pos_dim, dtype=jnp.float32, thresh=0.3):
        k1, k2, k3 = jax.random.split(k, 3)
        pos = jax.random.normal(k1, (batch, num_objects * pos_dim), dtype)
        pos_last = jax.random.normal(k2, (batch, num_objects * pos_dim), dtype)
        mask = (jax.random.uniform(k3, (batch, num_objects)) > thresh
                ).astype(jnp.float32)
        return pos, pos_last, mask

    keys = jax.random.split(key, 5)

    # case 1: nominal tiny module shape (b=2, o=4, c=2) -> fused XLA fallback.
    pos, pos_last, mask = make_case(keys[0], 2, 4, 2)
    loss = jax.block_until_ready(position_loss(pos, pos_last, mask, 4))
    ref = position_loss_ref(pos, pos_last, mask, 4)
    assert jnp.allclose(loss, ref, rtol=1e-5, atol=1e-6), (loss, ref)

    # case 2: multi-tile reduction grid (rows=32, tile_rows=8 -> 4 tiles).
    pos, pos_last, mask = make_case(keys[1], 2, 4, 512, thresh=0.5)
    loss = jax.block_until_ready(
        position_loss(pos, pos_last, mask, 4,
                      max_tile_rows=8, min_pallas_elements=1024))
    ref = position_loss_ref(pos, pos_last, mask, 4)
    assert jnp.allclose(loss, ref, rtol=1e-4, atol=1e-6), (loss, ref)

    # case 3: ragged last tile (rows=40, tile_rows=16) -> in-kernel row mask.
    pos, pos_last, mask = make_case(keys[2], 2, 4, 640)
    loss = jax.block_until_ready(
        position_loss(pos, pos_last, mask, 4,
                      max_tile_rows=16, min_pallas_elements=1024))
    ref = position_loss_ref(pos, pos_last, mask, 4)
    assert jnp.allclose(loss, ref, rtol=1e-4, atol=1e-6), (loss, ref)

    # case 4: bf16 inputs stream through at half the HBM bytes, cast in-kernel.
    pos, pos_last, mask = make_case(keys[3], 2, 4, 256, dtype=jnp.bfloat16)
    loss = jax.block_until_ready(
        position_loss(pos, pos_last, mask, 4, min_pallas_elements=1024))
    ref = position_loss_ref(pos, pos_last, mask, 4)
    assert jnp.allclose(loss, ref, rtol=1e-3, atol=1e-5), (loss, ref)

    # case 5: default parameters take the Pallas path (n = 65536, inner loop).
    pos, pos_last, mask = make_case(keys[4], 2, 4, 8192)
    loss = jax.block_until_ready(position_loss(pos, pos_last, mask, 4))
    ref = position_loss_ref(pos, pos_last, mask, 4)
    assert jnp.allclose(loss, ref, rtol=1e-4, atol=1e-6), (loss, ref)

    print("KERNEL_OK")
</pallas_src>

<mosaic_0001>
module attributes {stable_mosaic.version = 11 : i64} {
  func.func @_sum_sq_diff_kernel(%arg0: i32, %arg1: i32, %arg2: memref<8x128xf32, #tpu.memory_space<vmem>>, %arg3: memref<8x128xf32, #tpu.memory_space<vmem>>, %arg4: memref<8x128xf32, #tpu.memory_space<vmem>>, %arg5: memref<8x128xf32, #tpu.memory_space<vmem>>) attributes {dimension_semantics = [#tpu.dimension_semantics<parallel>, #tpu.dimension_semantics<arbitrary>], iteration_bounds = array<i64: 1, 4>, scalar_prefetch = 0 : i64, scratch_operands = 1 : i64, tpu.core_type = #tpu.core_type<tc>, window_params = [{transform_indices = @transform_0, window_bounds = array<i64: 8, 128>}, {transform_indices = @transform_1, window_bounds = array<i64: 8, 128>}, {transform_indices = @transform_2, window_bounds = array<i64: 8, 128>}]} {
    %c0_i32 = arith.constant 0 : i32
    %0 = arith.cmpi eq, %arg1, %c0_i32 : i32
    %1 = arith.extui %0 : i1 to i32
    %c0_i32_0 = arith.constant 0 : i32
    %2 = arith.cmpi ne, %1, %c0_i32_0 : i32
    scf.if %2 {
      %cst_8 = arith.constant 0.000000e+00 : f32
      %19 = vector.broadcast %cst_8 : f32 to vector<8x128xf32>
      %c0_9 = arith.constant 0 : index
      %c0_10 = arith.constant 0 : index
      %20 = vector.load %arg5[%c0_9, %c0_10] : memref<8x128xf32, #tpu.memory_space<vmem>>, vector<8x128xf32>
      tpu.vector_store %arg5[%c0_9, %c0_10], %19 {strides = array<i32>} : memref<8x128xf32, #tpu.memory_space<vmem>>, vector<8x128xf32>,
    } else {
    }
    %c0_i32_1 = arith.constant 0 : i32
    %c8_i32 = arith.constant 8 : i32
    %3 = arith.muli %c0_i32_1, %c8_i32 : i32
    %4 = tpu.assume_multiple %3, 8 : i32
    %5 = arith.index_cast %4 : i32 to index
    %c0 = arith.constant 0 : index
    %6 = vector.load %arg2[%5, %c0] : memref<8x128xf32, #tpu.memory_space<vmem>>, vector<8x128xf32>
    %7 = arith.index_cast %4 : i32 to index
    %c0_2 = arith.constant 0 : index
    %8 = vector.load %arg3[%7, %c0_2] : memref<8x128xf32, #tpu.memory_space<vmem>>, vector<8x128xf32>
    %9 = arith.subf %6, %8 : vector<8x128xf32>
    %10 = arith.mulf %9, %9 : vector<8x128xf32>
    %c0_3 = arith.constant 0 : index
    %c0_4 = arith.constant 0 : index
    %11 = vector.load %arg5[%c0_3, %c0_4] : memref<8x128xf32, #tpu.memory_space<vmem>>, vector<8x128xf32>
    %12 = vector.shape_cast %10 : vector<8x128xf32> to vector<1x8x128xf32>
    %cst = arith.constant dense<0.000000e+00> : vector<8x128xf32>
    %13 = vector.multi_reduction <add>, %12, %cst [0] : vector<1x8x128xf32> to vector<8x128xf32>
    %14 = arith.addf %11, %13 : vector<8x128xf32>
    %c0_5 = arith.constant 0 : index
    %c0_6 = arith.constant 0 : index
    %15 = vector.load %arg5[%c0_5, %c0_6] : memref<8x128xf32, #tpu.memory_space<vmem>>, vector<8x128xf32>
    tpu.vector_store %arg5[%c0_5, %c0_6], %14 {strides = array<i32>} : memref<8x128xf32, #tpu.memory_space<vmem>>, vector<8x128xf32>,
    %c1_i32 = arith.constant 1 : i32
    %c3_i32 = arith.constant 3 : i32
    %16 = arith.cmpi eq, %arg1, %c3_i32 : i32
    %17 = arith.extui %16 : i1 to i32
    %c0_i32_7 = arith.constant 0 : i32
    %18 = arith.cmpi ne, %17, %c0_i32_7 : i32
    scf.if %18 {
      %c0_8 = arith.constant 0 : index
      %c0_9 = arith.constant 0 : index
      %19 = vector.load %arg5[%c0_8, %c0_9] : memref<8x128xf32, #tpu.memory_space<vmem>>, vector<8x128xf32>
      %c0_10 = arith.constant 0 : index
      %c0_11 = arith.constant 0 : index
      %20 = vector.load %arg4[%c0_10, %c0_11] : memref<8x128xf32, #tpu.memory_space<vmem>>, vector<8x128xf32>
      tpu.vector_store %arg4[%c0_10, %c0_11], %19 {strides = array<i32>} : memref<8x128xf32, #tpu.memory_space<vmem>>, vector<8x128xf32>,
    } else {
    }
    return
  }
  func.func @transform_0(%arg0: i32, %arg1: i32) -> (i32, i32) {
    %c4_i32 = arith.constant 4 : i32
    %0 = arith.muli %arg0, %c4_i32 : i32
    %1 = arith.addi %0, %arg1 : i32
    %c0_i32 = arith.constant 0 : i32
    %c0_i32_0 = arith.constant 0 : i32
    return %1, %c0_i32 : i32, i32
  }
  func.func @transform_1(%arg0: i32, %arg1: i32) -> (i32, i32) {
    %c4_i32 = arith.constant 4 : i32
    %0 = arith.muli %arg0, %c4_i32 : i32
    %1 = arith.addi %0, %arg1 : i32
    %c0_i32 = arith.constant 0 : i32
    %c0_i32_0 = arith.constant 0 : i32
    return %1, %c0_i32 : i32, i32
  }
  func.func @transform_2(%arg0: i32, %arg1: i32) -> (i32, i32) {
    %c0_i32 = arith.constant 0 : i32
    %c0_i32_0 = arith.constant 0 : i32
    return %arg0, %c0_i32 : i32, i32
  }
}

</mosaic_0001>

<bundles_post_ra>
// kernel: tpu_custom_call.1
= control target key start
LH: loop header
LB: loop body
LE: loop exit
PB: predicated region body
PF: predicated region fallthrough
CT: control target
= control target key end

     0   :  { %7 = vsyncpa [#allocation4], 0  ;;  %s687_s0 = inlined_call_operand.hbm [shape: f32[32,128], index: 0, kind: input, shape index: {}]   ;;  %s688_s1 = inlined_call_operand.hbm [shape: f32[32,128], index: 1, kind: input, shape index: {}]   ;;  %s689_s2 = inlined_call_operand.hbm [shape: f32[8,128], index: 2, kind: output, shape index: {}]  }
   0x1   :  { %9 = vsyncpa [#allocation4 + $0x1], 0 }
   0x2   :  { %10 = vsyncpa [#allocation7], 0 }
   0x3   :  { %12 = vsyncpa [#allocation7 + $0x1], 0 }
   0x4   :  { %13 = vsyncpa [#allocation5], 0  ;;  %s588_s9 = smov 0   ;;  %s590_s10 = smov 0  }
   0x5   :  { %s592_s11 = smov 0   ;;  %s594_s12 = smov 0  }
   0x6   :  { %s596_s13 = smov 0   ;;  %s598_s14 = smov 0  }
   0x7 LB: > { %s339_s15 = sadd.s32 4294967295, %s569_s14   ;;  %s28_s16 = sadd.s32 1, %s565_s13  ;;  %s569_s14 = sphi %s598_s14, %s19_s14   ;;  %s565_s13 = sphi %s596_s13, %s696_s13   ;;  %s561_s12 = sphi %s594_s12, %s695_s12   ;;  %s557_s11 = sphi %s592_s11, %s694_s11   ;;  %s553_s10 = sphi %s590_s10, %s693_s10   ;;  %s549_s9 = sphi %s588_s9, %s692_s9  }
   0x8   : > { %p29_p0 = scmp.ge.s32.totalorder %s28_s16, 4  ;;  %s42_s17 = sadd.s32 1, %s557_s11 }
   0x9   : > { %p49_p1 = scmp.ne.s32.totalorder %s557_s11, %s553_s10  ;;  %p50_p2 = scmp.eq.s32.totalorder %s569_s14, 0 }
   0xa   : > { %s698_s16 = smov (%p29_p0, %s28_s16), 0  ;;  %p55_p4 = scmp.ne.s32.totalorder %s553_s10, %s549_s9 }
   0xb   : > { %p624_p3 = por %p50_p2, %p49_p1  ;;  %s39_s19 = ssub.s32 %s565_s13, %s698_s16 }
   0xc   : > { %p56_p5 = scmp.eq.s32.totalorder %s339_s15, 0  ;;  %p40_p6 = scmp.eq.s32.totalorder %s39_s19, 0 }
   0xd   : > { %p370_p8 = scmp.lt.s32.totalorder %s569_s14, 4  ;;  %s135_s22 = sand.u32 1, %s557_s11  }
   0xe   : > { %p633_p7 = por %p56_p5, %p55_p4  ;;  %s343_s23 = sshll.u32 %s565_s13, 3 }
   0xf   : > { %s639_s21 = scalar_select %p40_p6, %s557_s11, %s42_s17  }
  0x10   : > { %s342_s24 = sshll.u32 %s135_s22, 3  ;;  %s145_s27 = scalar_lea.hbm %s687_s0, %s343_s23 }
  0x11   : > { %s147_s28 = sshll.u32 %s145_s27, 4  ;;  %s139_s29 = scalar_lea.vmem [#allocation3], %s342_s24  ;;  %s148_s28 = int_to_ptr.hbm [resolvable:$true] %s147_s28 }
  0x12   : > { %s149_s30 = sshll.u32 %s139_s29, 4  ;;  %p364_p9 = pnand %p370_p8, %p624_p3  ;;  %s150_s30 = int_to_ptr.vmem [resolvable:$true] %s149_s30 }
  0x13   : > { %p346_p10 = scmp.ge.s32.totalorder %s569_s14, 1  ;;  %p175_p11 = scmp.lt.s32.totalorder %s569_s14, 5 }
  0x14   : > { %s136_s3 = scalar_lea.sflag [#allocation4], %s135_s22  ;;  %s166_s6 = scalar_lea.hbm %s688_s1, %s343_s23 }
  0x15   : > { %366 = dma.hbm_to_vmem [thread:$0]  (!%p364_p9), %s148_s28, 128, %s150_s30, %s136_s3  }
  0x16   : > { %p176_p12 = pnand %p346_p10, %p175_p11  ;;  %s168_s7 = sshll.u32 %s166_s6, 4  ;;  %s169_s7 = int_to_ptr.hbm [resolvable:$true] %s168_s7 }
  0x17   : > { %s160_s8 = scalar_lea.vmem [#allocation6], %s342_s24  ;;  %s157_s17 = scalar_lea.sflag [#allocation7], %s135_s22 }
  0x18   : > { %s170_s9 = sshll.u32 %s160_s8, 4  ;;  %179 = sbr.rel (%p176_p12) target bundleno = 65 (0x41), region = 28  ;;  %s171_s9 = int_to_ptr.vmem [resolvable:$true] %s170_s9 }
  0x19   : > { %369 = dma.hbm_to_vmem [thread:$0]  (!%p364_p9), %s169_s7, 128, %s171_s9, %s157_s17  }
  0x1a   : > { %s181_s18 = sand.u32 (!%p176_p12), 1, %s553_s10  }
  0x1b   : > { %s347_s19 = sshll.u32 (!%p176_p12), %s181_s18, 3  ;;  %s182_s25 = scalar_lea.sflag (!%p176_p12), [#allocation4], %s181_s18 }
  0x1c   : > { %s185_s26 = scalar_lea.vmem (!%p176_p12), [#allocation3], %s347_s19 }
  0x1d   : > { %536 = dma.done.wait (%p633_p7), %s182_s25, 128  }
  0x1e   : > { %538 = vsyncadd (%p633_p7), %s182_s25, 4294967168  ;;  %s192_s23 = scalar_lea.sflag [#allocation7], %s181_s18  ;;  %s195_s24 = scalar_lea.vmem [#allocation6], %s347_s19 }
  0x1f   : > { %540 = dma.done.wait (%p633_p7), %s192_s23, 128  }
  0x20   : > { %542 = vsyncadd (%p633_p7), %s192_s23, 4294967168  ;;  %p349_p13 = scmp.ne.s32.totalorder %s561_s12, 0 }
  0x22   : > { %224 = sbr.rel (%p349_p13) target bundleno = 41 (0x29), region = 40 }
  0x27   : > { %v571_v0 = vmov 0.0  }
  0x28   : > { %225 = vst [vmem:[#allocation2] sm:$0xff] %v571_v0 }
  0x29 PF: > { %v226_v1 = vld [vmem:[%s185_s26] sm:$0xff]  ;;  %v227_v2 = vld [vmem:[%s195_s24] sm:$0xff]  ;;  %p350_p0 = scmp.ne.s32.totalorder %s561_s12, 3 }
  0x2a   : > { %v228_v3 = vsub.f32 %v226_v1, %v227_v2 }
  0x2c   : > { %v229_v5 = vmul.f32 %v228_v3, %v228_v3 }
  0x2e   : > { %237 = sbr.rel (%p350_p0) target bundleno = 59 (0x3b), region = 44 }
  0x2f   : > { %v230_v4 = vld [vmem:[#allocation2] sm:$0xff] }
  0x30   : > { %v232_v6 = vadd.f32 %v230_v4, %v229_v5 }
  0x32   : > { %233 = vst [vmem:[#allocation2] sm:$0xff] %v232_v6 }
  0x39   : > { %v238_v7 = vld [vmem:[#allocation2] sm:$0xff] }
  0x3a   : > { %239 = vst [vmem:[#allocation8] sm:$0xff] %v238_v7 }
  0x3b PF: > { %p371_p1 = scmp.eq.s32.totalorder %s339_s15, 3  ;;  %s250_s27 = sshll.u32 %s689_s2, 4  ;;  %s251_s27 = int_to_ptr.hbm [resolvable:$true] %s250_s27 }
  0x3c   : > { %s572_s28 = smov [#allocation8]  }
  0x3d   : > { %s248_s29 = sshll.u32 %s572_s28, 4  ;;  %s249_s29 = int_to_ptr.vmem [resolvable:$true] %s248_s29 }
  0x3e   : > { %360 = dma.vmem_to_hbm [thread:$0]  (%p371_p1), %s249_s29, 128, %s251_s27, [#allocation5]  }
  0x3f   : > { %544 = dma.done.wait (%p371_p1), [#allocation5], 128  }
  0x40   : > { %546 = vsyncadd (%p371_p1), [#allocation5], 4294967168 }
  0x41 PF: > { %s19_s14 = sadd.s32 1, %s569_s14   ;;  %s692_s9 = smov %s553_s10 }
  0x42   : > { %p16_p2 = scmp.ge.s32.totalorder %s19_s14, 6   ;;  %s693_s10 = smov %s557_s11 }
  0x43   : > { %s694_s11 = smov %s639_s21  ;;  %s695_s12 = smov %s565_s13 }
  0x44   : > { %s696_s13 = smov %s698_s16  ;;  %18 = sbr.rel (!%p16_p2) target bundleno = 7 (0x7), region = 87 }
  0x49   :  { %264 = vsyncpa [#allocation4], 1 }
  0x4a   :  { %266 = vsyncpa [#allocation4 + $0x1], 1 }
  0x4b   :  { %267 = vsyncpa [#allocation7], 1 }
  0x4c   :  { %269 = vsyncpa [#allocation7 + $0x1], 1 }
  0x4d   :  { %270 = vsyncpa [#allocation5], 1 }
  0x4e   :  { %272 = vsyncpa [#allocation5 + $0x1], 1 }

</bundles_post_ra>
